<compile_context>
chip_gen: v5e
topology: v5e:2x2
jax: 0.10.0
libtpu: 0.0.40
codegen_flags: <defaults>
</compile_context>

<pallas_src>
import math

import jax
import jax.numpy as jnp
from jax.experimental import pallas as pl
from jax.experimental.pallas import tpu as pltpu


# ----------------------------------------------------------------------------
# Kernel: entity-tiled score matmul  pred_tile = q @ E_tile.T
# ----------------------------------------------------------------------------
def _pred_kernel(q_ref, e_ref, pred_ref):
    # Contract the 2*rank dims of q (batch, 2R) and E_tile (tile, 2R) directly
    # (no materialized transpose); single MXU push with K = 2*rank.
    pred_ref[...] = jax.lax.dot_general(
        q_ref[...], e_ref[...],
        dimension_numbers=(((1,), (1,)), ((), ())),
        preferred_element_type=jnp.float32,
    ).astype(pred_ref.dtype)


# ----------------------------------------------------------------------------
# Wrapper: gathers + complex query construction (glue) + Pallas entity sweep
# ----------------------------------------------------------------------------
def tnt_complex_forward(params, x, *, entity_tile=512, compute_dtype=None,
                        no_time_emb=False):
    E = params["E"]          # (n_entities, 2*rank)
    Rel = params["R"]        # (n_relations, 2*rank)
    T = params["T"]          # (n_timestamps, 2*rank)
    RnoT = params["R_noT"]   # (n_relations, 2*rank)

    n_ent, two_rank = E.shape
    rank = two_rank // 2
    entity_tile = min(entity_tile, n_ent)
    assert n_ent % entity_tile == 0, "n_entities must divide by entity_tile"

    # ---- glue: embedding lookups + O(batch*rank) elementwise query build ----
    lhs = jnp.take(E, x[:, 0], axis=0)
    rel = jnp.take(Rel, x[:, 1], axis=0)
    rnt = jnp.take(RnoT, x[:, 1], axis=0)
    rhs = jnp.take(E, x[:, 2], axis=0)
    time = jnp.take(T, x[:, 3], axis=0)

    lhs_re, lhs_im = lhs[:, :rank], lhs[:, rank:]
    rel_re, rel_im = rel[:, :rank], rel[:, rank:]
    rhs_re, rhs_im = rhs[:, :rank], rhs[:, rank:]
    t_re, t_im = time[:, :rank], time[:, rank:]
    rnt_re, rnt_im = rnt[:, :rank], rnt[:, rank:]

    # rrt = rel * time (complex);  full_rel = rrt + rel_no_time
    rrt_re = rel_re * t_re - rel_im * t_im
    rrt_im = rel_im * t_re + rel_re * t_im
    fr_re = rrt_re + rnt_re
    fr_im = rrt_im + rnt_im

    # q = lhs * full_rel (complex), laid out [real | imag] to match E's layout.
    q_re = lhs_re * fr_re - lhs_im * fr_im
    q_im = lhs_im * fr_re + lhs_re * fr_im
    q = jnp.concatenate([q_re, q_im], axis=1)        # (batch, 2*rank)

    batch = q.shape[0]

    q_in, e_in = q, E
    if compute_dtype is not None:
        q_in = q.astype(compute_dtype)
        e_in = E.astype(compute_dtype)

    pred = pl.pallas_call(
        _pred_kernel,
        out_shape=jax.ShapeDtypeStruct((batch, n_ent), jnp.float32),
        grid_spec=pltpu.PrefetchScalarGridSpec(
            num_scalar_prefetch=0,
            grid=(n_ent // entity_tile,),
            in_specs=[
                # Grid-invariant query block (tiny: batch x 2R -> a few KB even
                # double-buffered; at much larger batch*rank, single-buffer it
                # via pipeline_mode=pl.Buffered(1)).
                pl.BlockSpec((batch, two_rank), lambda j: (0, 0)),
                # Lane-dense entity-table tile streamed from HBM.
                pl.BlockSpec((entity_tile, two_rank), lambda j: (j, 0)),
            ],
            out_specs=pl.BlockSpec((batch, entity_tile), lambda j: (0, j)),
        ),
        compiler_params=pltpu.CompilerParams(
            # No cross-tile state -> entity sweep shards across TensorCores.
            dimension_semantics=("parallel",),
            vmem_limit_bytes=32 * 1024 * 1024,
        ),
    )(q_in, e_in)

    # Elementwise regularizer tensors (exactly as in the PyTorch forward).
    cbrt2 = math.pow(2.0, 1.0 / 3.0)
    regularizer = (
        cbrt2 * jnp.sqrt(lhs_re ** 2 + lhs_im ** 2),
        jnp.sqrt(rrt_re ** 2 + rrt_im ** 2),
        jnp.sqrt(rnt_re ** 2 + rnt_im ** 2),
        cbrt2 * jnp.sqrt(rhs_re ** 2 + rhs_im ** 2),
    )

    time_weight = T[:-1] if no_time_emb else T
    return pred, regularizer, time_weight


# ----------------------------------------------------------------------------
# Pure-JAX reference (correctness check only)
# ----------------------------------------------------------------------------
def tnt_complex_forward_ref(params, x, *, no_time_emb=False):
    E, Rel, T, RnoT = params["E"], params["R"], params["T"], params["R_noT"]
    rank = E.shape[1] // 2

    lhs = jnp.take(E, x[:, 0], axis=0)
    rel = jnp.take(Rel, x[:, 1], axis=0)
    rnt = jnp.take(RnoT, x[:, 1], axis=0)
    rhs = jnp.take(E, x[:, 2], axis=0)
    time = jnp.take(T, x[:, 3], axis=0)

    lhs = (lhs[:, :rank], lhs[:, rank:])
    rel = (rel[:, :rank], rel[:, rank:])
    rhs = (rhs[:, :rank], rhs[:, rank:])
    time = (time[:, :rank], time[:, rank:])
    rnt = (rnt[:, :rank], rnt[:, rank:])
    right = (E[:, :rank], E[:, rank:])

    rt = (rel[0] * time[0], rel[1] * time[0], rel[0] * time[1], rel[1] * time[1])
    rrt = (rt[0] - rt[3], rt[1] + rt[2])
    full_rel = (rrt[0] + rnt[0], rrt[1] + rnt[1])

    pred = ((lhs[0] * full_rel[0] - lhs[1] * full_rel[1]) @ right[0].T
            + (lhs[1] * full_rel[0] + lhs[0] * full_rel[1]) @ right[1].T)

    cbrt2 = math.pow(2.0, 1.0 / 3.0)
    reg = (
        cbrt2 * jnp.sqrt(lhs[0] ** 2 + lhs[1] ** 2),
        jnp.sqrt(rrt[0] ** 2 + rrt[1] ** 2),
        jnp.sqrt(rnt[0] ** 2 + rnt[1] ** 2),
        cbrt2 * jnp.sqrt(rhs[0] ** 2 + rhs[1] ** 2),
    )
    return pred, reg, (T[:-1] if no_time_emb else T)


def init_params(key, sizes, rank, init_size=0.01):
    n_ent, n_rel, _, n_ts = sizes
    k1, k2, k3, k4 = jax.random.split(key, 4)

    def emb(k, n):
        return init_size * jax.random.normal(k, (n, 2 * rank), jnp.float32)

    return {
        "E": emb(k1, n_ent),       # embeddings[0]  (entities)
        "R": emb(k2, n_rel),       # embeddings[1]  (relations, timed)
        "T": emb(k3, n_ts),        # embeddings[2]  (timestamps)
        "R_noT": emb(k4, n_rel),   # embeddings[3]  (relations, no-time)
    }


if __name__ == "__main__":
    sizes = (1024, 16, 1024, 32)   # (n_entities, n_relations, n_entities, n_timestamps)
    rank = 32
    batch = 16

    key = jax.random.PRNGKey(0)
    pkey, xkey = jax.random.split(key)
    params = init_params(pkey, sizes, rank)

    ks = jax.random.split(xkey, 4)
    x = jnp.stack(
        [
            jax.random.randint(ks[0], (batch,), 0, sizes[0]),
            jax.random.randint(ks[1], (batch,), 0, sizes[1]),
            jax.random.randint(ks[2], (batch,), 0, sizes[0]),
            jax.random.randint(ks[3], (batch,), 0, sizes[3]),
        ],
        axis=1,
    ).astype(jnp.int32)

    # f32 path.
    pred, reg, t_weight = tnt_complex_forward(params, x, entity_tile=512)
    jax.block_until_ready(pred)
    for r in reg:
        jax.block_until_ready(r)

    pred_ref, reg_ref, t_ref = tnt_complex_forward_ref(params, x)
    assert pred.shape == (batch, sizes[0])
    assert jnp.allclose(pred, pred_ref, rtol=2e-3, atol=1e-6), "pred mismatch"
    for a, b in zip(reg, reg_ref):
        assert a.shape == (batch, rank)
        assert jnp.allclose(a, b, rtol=2e-3, atol=1e-6), "regularizer mismatch"
    assert jnp.allclose(t_weight, t_ref), "time embedding mismatch"

    # bf16 entity-table path (roofline lever at scale); f32 accumulation.
    pred_bf16, _, _ = tnt_complex_forward(
        params, x, entity_tile=512, compute_dtype=jnp.bfloat16)
    jax.block_until_ready(pred_bf16)
    assert jnp.allclose(pred_bf16, pred_ref, rtol=5e-2, atol=1e-6), \
        "bf16 pred mismatch"

    print("KERNEL_OK")
</pallas_src>

<mosaic_0001>
module attributes {stable_mosaic.version = 11 : i64} {
  func.func @_pred_kernel(%arg0: i32, %arg1: memref<16x64xf32, #tpu.memory_space<vmem>>, %arg2: memref<512x64xf32, #tpu.memory_space<vmem>>, %arg3: memref<16x512xf32, #tpu.memory_space<vmem>>) attributes {dimension_semantics = [#tpu.dimension_semantics<parallel>], iteration_bounds = array<i64: 2>, scalar_prefetch = 0 : i64, scratch_operands = 0 : i64, tpu.core_type = #tpu.core_type<tc>, window_params = [{pipeline_mode = #tpu.pipeline_mode<synchronous>, transform_indices = @transform_0, window_bounds = array<i64: 16, 64>}, {transform_indices = @transform_1, window_bounds = array<i64: 512, 64>}, {transform_indices = @transform_2, window_bounds = array<i64: 16, 512>}]} {
    %c0 = arith.constant 0 : index
    %c0_0 = arith.constant 0 : index
    %0 = vector.load %arg1[%c0, %c0_0] : memref<16x64xf32, #tpu.memory_space<vmem>>, vector<16x64xf32>
    %c0_1 = arith.constant 0 : index
    %c0_2 = arith.constant 0 : index
    %1 = vector.load %arg2[%c0_1, %c0_2] : memref<512x64xf32, #tpu.memory_space<vmem>>, vector<512x64xf32>
    %cst = arith.constant dense<0.000000e+00> : vector<16x512xf32>
    %2 = tpu.matmul %0, %1, %cst {dimension_numbers = #tpu.dot_dimension_numbers<[1], [1], [0], [0], [0, 0, 1, 0], [], []>} : vector<16x64xf32>, vector<512x64xf32>, vector<16x512xf32> -> vector<16x512xf32>
    %c0_3 = arith.constant 0 : index
    %c0_4 = arith.constant 0 : index
    %3 = vector.load %arg3[%c0_3, %c0_4] : memref<16x512xf32, #tpu.memory_space<vmem>>, vector<16x512xf32>
    tpu.vector_store %arg3[%c0_3, %c0_4], %2 {strides = array<i32>} : memref<16x512xf32, #tpu.memory_space<vmem>>, vector<16x512xf32>,
    return
  }
  func.func @transform_0(%arg0: i32) -> (i32, i32) {
    %c0_i32 = arith.constant 0 : i32
    %c0_i32_0 = arith.constant 0 : i32
    %c0_i32_1 = arith.constant 0 : i32
    return %c0_i32, %c0_i32_0 : i32, i32
  }
  func.func @transform_1(%arg0: i32) -> (i32, i32) {
    %c0_i32 = arith.constant 0 : i32
    %c0_i32_0 = arith.constant 0 : i32
    return %arg0, %c0_i32 : i32, i32
  }
  func.func @transform_2(%arg0: i32) -> (i32, i32) {
    %c0_i32 = arith.constant 0 : i32
    %c0_i32_0 = arith.constant 0 : i32
    return %c0_i32, %arg0 : i32, i32
  }
}

</mosaic_0001>

<bundles_post_ra>
// kernel: tpu_custom_call.1
= control target key start
LH: loop header
LB: loop body
LE: loop exit
PB: predicated region body
PF: predicated region fallthrough
CT: control target
= control target key end

     0   :  { %7 = vsyncpa [#allocation3], 0  ;;  %s1025_s0 = inlined_call_operand.vmem [shape: f32[16,64], index: 0, kind: input, shape index: {}]   ;;  %s1026_s1 = inlined_call_operand.vmem [shape: f32[1024,64], index: 1, kind: input, shape index: {}]   ;;  %s1027_s2 = inlined_call_operand.hbm [shape: f32[16,1024], index: 2, kind: output, shape index: {}]  }
   0x1   :  { %9 = vsyncpa [#allocation3 + $0x1], 0  ;;  %s797_s9 = smov 0   ;;  %s799_s10 = smov 0  }
   0x2   :  { %s801_s11 = smov 0   ;;  %s803_s12 = smov 0  }
   0x3 LB: > { %s818_s13 = sadd.s32 4294967295, %s777_s12   ;;  %s588_s14 = sadd.s32 4294967294, %s777_s12   ;;  %s777_s12 = sphi %s803_s12, %s1033_s12   ;;  %s773_s11 = sphi %s801_s11, %s1032_s11   ;;  %s769_s10 = sphi %s799_s10, %s1031_s10   ;;  %s765_s9 = sphi %s797_s9, %s1030_s9  }
   0x4   : > { %s822_s15 = sadd.s32 1, %s777_s12   ;;  %s69_s16 = sadd.s32 1, %s773_s11 }
   0x5   : > { %s66_s17 = ssub.s32 %s777_s12, %s822_s15  ;;  %p79_p0 = scmp.ne.s32.totalorder %s773_s11, %s769_s10 }
   0x6   : > { %p67_p1 = scmp.eq.s32.totalorder %s66_s17, 0  ;;  %p80_p2 = scmp.eq.s32.totalorder %s818_s13, 1 }
   0x7   : > { %p85_p3 = scmp.ne.s32.totalorder %s769_s10, %s765_s9  ;;  %p86_p4 = scmp.eq.s32.totalorder %s588_s14, 1 }
   0x8   : > { %s833_s18 = scalar_select %p67_p1, %s773_s11, %s69_s16  }
   0x9   : > { %p835_p5 = por %p80_p2, %p79_p0  ;;  %p839_p6 = por %p86_p4, %p85_p3 }
   0xa   : > { %p591_p7 = scmp.ge.s32.totalorder %s777_s12, 1  ;;  %p116_p8 = scmp.lt.s32.totalorder %s777_s12, 3 }
   0xc   : > { %p117_p9 = pnand %p591_p7, %p116_p8 }
   0xd   : > { %s593_s21 = sshll.u32 (!%p117_p9), %s818_s13, 6  ;;  %s135_s30 = sand.u32 (!%p117_p9), 1, %s769_s10  }
   0xe   : > { %120 = sbr.rel (%p117_p9) target bundleno = 232 (0xe8), region = 28  ;;  %p139_p10 = scmp.lt.s32.totalorder (!%p117_p9), %s593_s21, 127 }
   0xf   : > { %s592_s3 = sshll.u32 (!%p117_p9), %s135_s30, 6  ;;  %s672_s5 = sshll.u32 (!%p117_p9), %s818_s13, 5 }
  0x10   : > { %s137_s4 = scalar_lea.vmem (!%p117_p9), [#allocation2], %s592_s3  ;;  %s522_s8 = scalar_lea.hbm (!%p117_p9), %s1027_s2, %s672_s5 }
  0x11   : > { %s523_s14 = sshll.u32 (!%p117_p9), %s137_s4, 4  ;;  %s525_s16 = sshll.u32 (!%p117_p9), %s522_s8, 4  ;;  %s524_s14 = int_to_ptr.vmem [resolvable:$true] %s523_s14  ;;  %s526_s16 = int_to_ptr.hbm [resolvable:$true] %s525_s16 }
  0x12   : > { %s511_s13 = scalar_lea.sflag (!%p117_p9), [#allocation3], %s135_s30  ;;  %s729_s17 = sshra.s32 (!%p117_p9), %s526_s16, 4  ;;  %s730_s17 = int_to_ptr.hbm [resolvable:$true] %s729_s17 }
  0x13   : > { %s1035_s21 = smov (!%p139_p10, %s593_s21), 127  ;;  %vm211_vm0 = vcmask 523264   ;;  %s735_s24 = scalar_lea.hbm %s1027_s2, 128 }
  0x14   : > { %s594_s22 = sshll.u32 %s1035_s21, 3  ;;  %s731_s21 = scalar_lea.hbm %s730_s17, 64 }
  0x15   : > { %s849_s25 = scalar_lea.vmem %s1026_s1, %s594_s22  ;;  %p732_p11 = scmp.ne.s32.totalorder %s730_s17, %s731_s21 }
  0x16   : > { %v194_v0 = vld [vmem:[%s849_s25 + $0x178] sm:$0xff]  ;;  %v193_v4 = vld [vmem:[%s849_s25 + $0x170] sm:$0xff]  ;;  %v192_v8 = vld [vmem:[%s849_s25 + $0x168] sm:$0xff]  ;;  %p736_p0 = scmp.lt.s32.totalorder %s730_s17, %s1027_s2  ;;  %p737_p1 = scmp.lt.s32.totalorder %s735_s24, %s731_s21 }
  0x17   : > { %v210_v1 = vld [vmem:[%s849_s25 + $0x1f8] sm:$0xff]  ;;  %631 = vmatpush.xpose.msk.msra.mxu2 %vm211_vm0, %v194_v0  ;;  %v209_v5 = vld [vmem:[%s849_s25 + $0x1f0] sm:$0xff]  ;;  %v208_v9 = vld [vmem:[%s849_s25 + $0x1e8] sm:$0xff]  ;;  %p733_p12 = pnand %p732_p11, %p835_p5 }
  0x18   : > { %649 = vmatpush.xpose.msk.msra.mxu3 %vm211_vm0, %v210_v1  ;;  %v162_v2 = vld [vmem:[%s849_s25 + $0x78] sm:$0xff]  ;;  %v161_v6 = vld [vmem:[%s849_s25 + $0x70] sm:$0xff]  ;;  %v160_v10 = vld [vmem:[%s849_s25 + $0x68] sm:$0xff]  ;;  %p738_p2 = por %p737_p1, %p736_p0 }
  0x19   : > { %v178_v3 = vld [vmem:[%s849_s25 + $0xf8] sm:$0xff]  ;;  %595 = vmatpush.xpose.msk.msra.mxu0 %vm211_vm0, %v162_v2  ;;  %v177_v7 = vld [vmem:[%s849_s25 + $0xf0] sm:$0xff]  ;;  %v176_v11 = vld [vmem:[%s849_s25 + $0xe8] sm:$0xff]  ;;  %p734_p13 = pneg %p733_p12 }
  0x1a   : > { %613 = vmatpush.xpose.msk.msra.mxu1 %vm211_vm0, %v178_v3  ;;  %v191_v12 = vld [vmem:[%s849_s25 + $0x160] sm:$0xff]  ;;  %v190_v16 = vld [vmem:[%s849_s25 + $0x158] sm:$0xff]  ;;  %v189_v20 = vld [vmem:[%s849_s25 + $0x150] sm:$0xff] }
  0x1b   : > { %632 = vmatpush.xpose.msk.msra.mxu2 %vm211_vm0, %v193_v4  ;;  %v207_v13 = vld [vmem:[%s849_s25 + $0x1e0] sm:$0xff]  ;;  %v206_v17 = vld [vmem:[%s849_s25 + $0x1d8] sm:$0xff]  ;;  %v205_v21 = vld [vmem:[%s849_s25 + $0x1d0] sm:$0xff]  ;;  %p739_p3 = pnand %p738_p2, %p734_p13 }
  0x1c   : > { %650 = vmatpush.xpose.msk.msra.mxu3 %vm211_vm0, %v209_v5  ;;  %v159_v14 = vld [vmem:[%s849_s25 + $0x60] sm:$0xff]  ;;  %v158_v18 = vld [vmem:[%s849_s25 + $0x58] sm:$0xff]  ;;  %v157_v22 = vld [vmem:[%s849_s25 + $0x50] sm:$0xff] }
  0x1d   : > { %596 = vmatpush.xpose.msk.msra.mxu0 %vm211_vm0, %v161_v6  ;;  %v175_v15 = vld [vmem:[%s849_s25 + $0xe0] sm:$0xff]  ;;  %v174_v19 = vld [vmem:[%s849_s25 + $0xd8] sm:$0xff]  ;;  %v173_v23 = vld [vmem:[%s849_s25 + $0xd0] sm:$0xff] }
  0x1e   : > { %614 = vmatpush.xpose.msk.msra.mxu1 %vm211_vm0, %v177_v7  ;;  %v188_v24 = vld [vmem:[%s849_s25 + $0x148] sm:$0xff]  ;;  %v187_v28 = vld [vmem:[%s849_s25 + $0x140] sm:$0xff]  ;;  %v186_v32 = vld [vmem:[%s849_s25 + $0x138] sm:$0xff] }
  0x1f   : > { %633 = vmatpush.xpose.msk.msra.mxu2 %vm211_vm0, %v192_v8  ;;  %v204_v25 = vld [vmem:[%s849_s25 + $0x1c8] sm:$0xff]  ;;  %v203_v29 = vld [vmem:[%s849_s25 + $0x1c0] sm:$0xff]  ;;  %v202_v33 = vld [vmem:[%s849_s25 + $0x1b8] sm:$0xff] }
  0x20   : > { %651 = vmatpush.xpose.msk.msra.mxu3 %vm211_vm0, %v208_v9  ;;  %v156_v26 = vld [vmem:[%s849_s25 + $0x48] sm:$0xff]  ;;  %v155_v30 = vld [vmem:[%s849_s25 + $0x40] sm:$0xff]  ;;  %v154_v34 = vld [vmem:[%s849_s25 + $0x38] sm:$0xff] }
  0x21   : > { %597 = vmatpush.xpose.msk.msra.mxu0 %vm211_vm0, %v160_v10  ;;  %v172_v27 = vld [vmem:[%s849_s25 + $0xc8] sm:$0xff]  ;;  %v171_v31 = vld [vmem:[%s849_s25 + $0xc0] sm:$0xff]  ;;  %v170_v35 = vld [vmem:[%s849_s25 + $0xb8] sm:$0xff] }
  0x22   : > { %615 = vmatpush.xpose.msk.msra.mxu1 %vm211_vm0, %v176_v11  ;;  %v185_v36 = vld [vmem:[%s849_s25 + $0x130] sm:$0xff]  ;;  %v184_v40 = vld [vmem:[%s849_s25 + $0x128] sm:$0xff]  ;;  %v183_v44 = vld [vmem:[%s849_s25 + $0x120] sm:$0xff] }
  0x23   : > { %634 = vmatpush.xpose.msk.msra.mxu2 %vm211_vm0, %v191_v12  ;;  %v201_v37 = vld [vmem:[%s849_s25 + $0x1b0] sm:$0xff]  ;;  %v200_v41 = vld [vmem:[%s849_s25 + $0x1a8] sm:$0xff]  ;;  %v199_v45 = vld [vmem:[%s849_s25 + $0x1a0] sm:$0xff] }
  0x24   : > { %652 = vmatpush.xpose.msk.msra.mxu3 %vm211_vm0, %v207_v13  ;;  %v153_v38 = vld [vmem:[%s849_s25 + $0x30] sm:$0xff]  ;;  %v152_v42 = vld [vmem:[%s849_s25 + $0x28] sm:$0xff]  ;;  %v151_v46 = vld [vmem:[%s849_s25 + $0x20] sm:$0xff] }
  0x25   : > { %598 = vmatpush.xpose.msk.msra.mxu0 %vm211_vm0, %v159_v14  ;;  %v169_v39 = vld [vmem:[%s849_s25 + $0xb0] sm:$0xff]  ;;  %v168_v43 = vld [vmem:[%s849_s25 + $0xa8] sm:$0xff]  ;;  %v167_v47 = vld [vmem:[%s849_s25 + $0xa0] sm:$0xff] }
  0x26   : > { %616 = vmatpush.xpose.msk.msra.mxu1 %vm211_vm0, %v175_v15  ;;  %v182_v48 = vld [vmem:[%s849_s25 + $0x118] sm:$0xff]  ;;  %v181_v52 = vld [vmem:[%s849_s25 + $0x110] sm:$0xff]  ;;  %v180_v56 = vld [vmem:[%s849_s25 + $0x108] sm:$0xff] }
  0x27   : > { %635 = vmatpush.xpose.msk.msra.mxu2 %vm211_vm0, %v190_v16  ;;  %v198_v49 = vld [vmem:[%s849_s25 + $0x198] sm:$0xff]  ;;  %v197_v53 = vld [vmem:[%s849_s25 + $0x190] sm:$0xff]  ;;  %v196_v57 = vld [vmem:[%s849_s25 + $0x188] sm:$0xff] }
  0x28   : > { %653 = vmatpush.xpose.msk.msra.mxu3 %vm211_vm0, %v206_v17  ;;  %v150_v50 = vld [vmem:[%s849_s25 + $0x18] sm:$0xff]  ;;  %v149_v54 = vld [vmem:[%s849_s25 + $0x10] sm:$0xff]  ;;  %v148_v58 = vld [vmem:[%s849_s25 + $0x8] sm:$0xff] }
  0x29   : > { %599 = vmatpush.xpose.msk.msra.mxu0 %vm211_vm0, %v158_v18  ;;  %v166_v51 = vld [vmem:[%s849_s25 + $0x98] sm:$0xff]  ;;  %v165_v55 = vld [vmem:[%s849_s25 + $0x90] sm:$0xff]  ;;  %v164_v59 = vld [vmem:[%s849_s25 + $0x88] sm:$0xff] }
  0x2a   : > { %617 = vmatpush.xpose.msk.msra.mxu1 %vm211_vm0, %v174_v19  ;;  %v179_v60 = vld [vmem:[%s849_s25 + $0x100] sm:$0xff]  ;;  %v146_v1 = vld [vmem:[%s1025_s0 + $0x8] sm:$0xff] }
  0x2b   : > { %636 = vmatpush.xpose.msk.msra.mxu2 %vm211_vm0, %v189_v20  ;;  %v195_v61 = vld [vmem:[%s849_s25 + $0x180] sm:$0xff] }
  0x2c   : > { %654 = vmatpush.xpose.msk.msra.mxu3 %vm211_vm0, %v205_v21  ;;  %v147_v62 = vld [vmem:[%s849_s25] sm:$0xff] }
  0x2d   : > { %600 = vmatpush.xpose.msk.msra.mxu0 %vm211_vm0, %v157_v22  ;;  %v163_v63 = vld [vmem:[%s849_s25 + $0x80] sm:$0xff] }
  0x2e   : > { %618 = vmatpush.xpose.msk.msra.mxu1 %vm211_vm0, %v173_v23  ;;  %v145_v0 = vld [vmem:[%s1025_s0] sm:$0xff] }
  0x2f   : > { %637 = vmatpush.xpose.msk.msra.mxu2 %vm211_vm0, %v188_v24 }
  0x30   : > { %655 = vmatpush.xpose.msk.msra.mxu3 %vm211_vm0, %v204_v25 }
  0x31   : > { %601 = vmatpush.xpose.msk.msra.mxu0 %vm211_vm0, %v156_v26 }
  0x32   : > { %619 = vmatpush.xpose.msk.msra.mxu1 %vm211_vm0, %v172_v27 }
  0x33   : > { %638 = vmatpush.xpose.msk.msra.mxu2 %vm211_vm0, %v187_v28 }
  0x34   : > { %656 = vmatpush.xpose.msk.msra.mxu3 %vm211_vm0, %v203_v29 }
  0x35   : > { %602 = vmatpush.xpose.msk.msra.mxu0 %vm211_vm0, %v155_v30 }
  0x36   : > { %620 = vmatpush.xpose.msk.msra.mxu1 %vm211_vm0, %v171_v31 }
  0x37   : > { %639 = vmatpush.xpose.msk.msra.mxu2 %vm211_vm0, %v186_v32 }
  0x38   : > { %657 = vmatpush.xpose.msk.msra.mxu3 %vm211_vm0, %v202_v33 }
  0x39   : > { %603 = vmatpush.xpose.msk.msra.mxu0 %vm211_vm0, %v154_v34 }
  0x3a   : > { %621 = vmatpush.xpose.msk.msra.mxu1 %vm211_vm0, %v170_v35 }
  0x3b   : > { %640 = vmatpush.xpose.msk.msra.mxu2 %vm211_vm0, %v185_v36 }
  0x3c   : > { %658 = vmatpush.xpose.msk.msra.mxu3 %vm211_vm0, %v201_v37 }
  0x3d   : > { %604 = vmatpush.xpose.msk.msra.mxu0 %vm211_vm0, %v153_v38 }
  0x3e   : > { %622 = vmatpush.xpose.msk.msra.mxu1 %vm211_vm0, %v169_v39 }
  0x3f   : > { %641 = vmatpush.xpose.msk.msra.mxu2 %vm211_vm0, %v184_v40 }
  0x40   : > { %659 = vmatpush.xpose.msk.msra.mxu3 %vm211_vm0, %v200_v41 }
  0x41   : > { %605 = vmatpush.xpose.msk.msra.mxu0 %vm211_vm0, %v152_v42 }
  0x42   : > { %623 = vmatpush.xpose.msk.msra.mxu1 %vm211_vm0, %v168_v43 }
  0x43   : > { %642 = vmatpush.xpose.msk.msra.mxu2 %vm211_vm0, %v183_v44 }
  0x44   : > { %660 = vmatpush.xpose.msk.msra.mxu3 %vm211_vm0, %v199_v45 }
  0x45   : > { %606 = vmatpush.xpose.msk.msra.mxu0 %vm211_vm0, %v151_v46 }
  0x46   : > { %624 = vmatpush.xpose.msk.msra.mxu1 %vm211_vm0, %v167_v47 }
  0x47   : > { %643 = vmatpush.xpose.msk.msra.mxu2 %vm211_vm0, %v182_v48 }
  0x48   : > { %661 = vmatpush.xpose.msk.msra.mxu3 %vm211_vm0, %v198_v49 }
  0x49   : > { %607 = vmatpush.xpose.msk.msra.mxu0 %vm211_vm0, %v150_v50 }
  0x4a   : > { %625 = vmatpush.xpose.msk.msra.mxu1 %vm211_vm0, %v166_v51 }
  0x4b   : > { %644 = vmatpush.xpose.msk.msra.mxu2 %vm211_vm0, %v181_v52 }
  0x4c   : > { %662 = vmatpush.xpose.msk.msra.mxu3 %vm211_vm0, %v197_v53 }
  0x4d   : > { %608 = vmatpush.xpose.msk.msra.mxu0 %vm211_vm0, %v149_v54 }
  0x4e   : > { %626 = vmatpush.xpose.msk.msra.mxu1 %vm211_vm0, %v165_v55 }
  0x4f   : > { %645 = vmatpush.xpose.msk.msra.mxu2 %vm211_vm0, %v180_v56 }
  0x50   : > { %663 = vmatpush.xpose.msk.msra.mxu3 %vm211_vm0, %v196_v57 }
  0x51   : > { %609 = vmatpush.xpose.msk.msra.mxu0 %vm211_vm0, %v148_v58 }
  0x52   : > { %627 = vmatpush.xpose.msk.msra.mxu1 %vm211_vm0, %v164_v59 }
  0x53   : > { %646 = vmatpush.xpose.msk.msra.mxu2 %vm211_vm0, %v179_v60 }
  0x54   : > { %664 = vmatpush.xpose.msk.msra.mxu3 %vm211_vm0, %v195_v61 }
  0x55   : > { %610 = vmatpush.xpose.msk.msra.mxu0 %vm211_vm0, %v147_v62 }
  0x56   : > { %628 = vmatpush.xpose.msk.msra.mxu1 %vm211_vm0, %v163_v63  ;;  %647 = vmatmul.msk.f32.vlgmr.msra.gmra.mxu2 %vm211_vm0, %v145_v0 }
  0x57   : > { %665 = vmatmul.msk.f32.vlgmr.msra.gmra.mxu3 %vm211_vm0, %v145_v0 }
  0x58   : > { %611 = vmatmul.msk.f32.vlgmr.msra.gmra.mxu0 %vm211_vm0, %v145_v0 }
  0x59   : > { %629 = vmatmul.msk.f32.vlgmr.msra.gmra.mxu1 %vm211_vm0, %v145_v0 }
  0x5e   : > { %648 = vmatmul.msk.f32.gmra.mxu2 %vm211_vm0, %v146_v1 }
  0x5f   : > { %666 = vmatmul.msk.f32.gmra.mxu3 %vm211_vm0, %v146_v1 }
  0x60   : > { %612 = vmatmul.msk.f32.gmra.mxu0 %vm211_vm0, %v146_v1 }
  0x61   : > { %630 = vmatmul.msk.f32.gmra.mxu1 %vm211_vm0, %v146_v1 }
  0xd5   : > { %v427_v2 = vpop.f32.mrf.mxu0 }
  0xd6   : > { %v450_v3 = vpop.f32.mrf.mxu1  ;;  %502 = vst [vmem:[%s137_s4] sm:$0xff] %v427_v2 }
  0xd7   : > { %503 = vst [vmem:[%s137_s4 + $0x8] sm:$0xff] %v450_v3 }
  0xd9   : > { %v473_v4 = vpop.f32.mrf.mxu2 }
  0xda   : > { %v496_v5 = vpop.f32.mrf.mxu3  ;;  %504 = vst [vmem:[%s137_s4 + $0x10] sm:$0xff] %v473_v4 }
  0xdb   : > { %505 = vst [vmem:[%s137_s4 + $0x18] sm:$0xff] %v496_v5 }
  0xdd   : > { %v430_v6 = vpop.f32.mrf.mxu0 }
  0xde   : > { %v453_v7 = vpop.f32.mrf.mxu1  ;;  %506 = vst [vmem:[%s137_s4 + $0x20] sm:$0xff] %v430_v6 }
  0xdf   : > { %507 = vst [vmem:[%s137_s4 + $0x28] sm:$0xff] %v453_v7 }
  0xe1   : > { %v476_v8 = vpop.f32.mrf.mxu2 }
  0xe2   : > { %v499_v9 = vpop.f32.mrf.mxu3  ;;  %508 = vst [vmem:[%s137_s4 + $0x30] sm:$0xff] %v476_v8 }
  0xe3   : > { %509 = vst [vmem:[%s137_s4 + $0x38] sm:$0xff] %v499_v9 }
  0xe4   : > { %742 = shalt.err (!%p739_p3)
}
  0xe5   : > { %s779_s27 = smov 512   ;;  %s780_s28 = smov 1024  }
  0xe6   : > { %s781_s29 = smov 32  }
  0xe7   : > { %673 = dma.vmem_to_hbm [thread:$0]  (%p835_p5), %s524_s14, 1024, %s526_s16, %s511_s13, %s779_s27, %s780_s28, %s781_s29  }
  0xe8 PF: > { %p679_p4 = scmp.ge.s32.totalorder %s777_s12, 2  ;;  %s540_s30 = sand.u32 1, %s765_s9  }
  0xe9   : > { %s541_s3 = scalar_lea.sflag [#allocation3], %s540_s30 }
  0xea   : > { %p676_p7 = pnand %p679_p4, %p839_p6 }
  0xec   : > { %p677_p8 = pneg %p676_p7 }
  0xee   : > { %760 = dma.done.wait (%p677_p8), %s541_s3, 1024  }
  0xef   : > { %762 = vsyncadd (%p677_p8), %s541_s3, 4294966272  ;;  %p12_p9 = scmp.ge.s32.totalorder %s822_s15, 4   ;;  %s1030_s9 = smov %s769_s10 }
  0xf0   : > { %s1031_s10 = smov %s773_s11  ;;  %s1032_s11 = smov %s833_s18 }
  0xf1   : > { %s1033_s12 = smov %s822_s15  ;;  %14 = sbr.rel (!%p12_p9) target bundleno = 3 (0x3), region = 63 }
  0xf6   :  { %547 = vsyncpa [#allocation3], 1 }
  0xf7   :  { %549 = vsyncpa [#allocation3 + $0x1], 1 }

</bundles_post_ra>
